<compile_context>
chip_gen: v6e
topology: v6e:2x2x1
jax: 0.10.0
libtpu: 0.0.40
codegen_flags: <defaults>
</compile_context>

<pallas_src>
import math

import jax
import jax.numpy as jnp
from jax.experimental import pallas as pl
from jax.experimental.pallas import tpu as pltpu


def _copy_kernel(x_ref, o_ref):
    # identity copy of one lane-dense VMEM tile (1 vld + 1 vst per vreg,
    # fully hidden behind the HBM DMA on every generation)
    o_ref[...] = x_ref[...]


# lane extents to try, widest first (wide unmasked vst is cheapest)
_LANE_CANDIDATES = (2048, 1024, 512, 256, 128)


def _sublane_multiple(dtype) -> int:
    # packed dtypes need more sublanes per native tile: f32 -> 8, bf16 -> 16, int8 -> 32
    itemsize = jnp.dtype(dtype).itemsize
    return 8 * max(1, 4 // max(1, itemsize))


def _pick_slab(total, dtype):
    """Factor `total` into a lane-dense (rows, lane) slab, or return None."""
    sub = _sublane_multiple(dtype)
    # prefer a factorization whose row count is sublane-aligned -> unmasked vst
    for lane in _LANE_CANDIDATES:
        if total % lane == 0 and (total // lane) % sub == 0:
            return total // lane, lane
    # fall back: any multiple-of-128 lane extent
    for lane in _LANE_CANDIDATES:
        if total % lane == 0:
            return total // lane, lane
    return None


def _tpu_vmem_config():
    """(tile_bytes, vmem_limit_bytes) derived from the chip's physical VMEM.

    - v5e/v6e (128 MiB VMEM): 12 MiB tiles, 72 MiB scoped limit (well above the
      16/32 MiB defaults, which a fixed 4 MiB tile previously sat right at on v5e).
    - v7x (64 MiB VMEM): 8 MiB tiles, 48 MiB scoped limit (4 double-buffered
      tiles = 32 MiB, leaving headroom under the 64 MiB physical capacity).
    - unknown / query failure: fall back to the conservative v7x numbers.
    """
    try:
        info = pltpu.get_tpu_info()
        vmem_cap = int(getattr(info, "vmem_capacity_bytes", 0)) or (64 << 20)
    except Exception:
        vmem_cap = 64 << 20
    tile_bytes = max(2 << 20, min(12 << 20, vmem_cap // 8))
    # room for 2 double-buffered (in + out) tiles plus internal scratch, but
    # never more than 3/4 of physical VMEM.
    vmem_limit = int(min(vmem_cap * 3 // 4, 6 * tile_bytes))
    return tile_bytes, vmem_limit


def _pallas_identity_copy(x2d, *, alias_input: bool = False):
    """Tiled, pipelined identity copy of a lane-dense 2-D slab.

    Returns None when no bounded-VMEM kernel layout exists (caller should use
    the free metadata-only reshape instead).
    """
    rows, lane = x2d.shape
    itemsize = jnp.dtype(x2d.dtype).itemsize
    sub = _sublane_multiple(x2d.dtype)
    tile_bytes, vmem_limit = _tpu_vmem_config()
    total_bytes = rows * lane * itemsize

    # purely bandwidth-bound: read + write of the whole slab
    cost = pl.CostEstimate(flops=0, transcendentals=0,
                           bytes_accessed=2 * total_bytes)
    # Only alias input->output when the caller will actually donate the input
    # at a jit boundary; otherwise an unconditional alias forces XLA to insert
    # a defensive copy (3x HBM traffic instead of 2x).
    aliases = {0: 0} if alias_input else {}

    if rows % sub == 0:
        # Tiled grid over the sublane axis -> DMA-in / DMA-out overlap.
        max_rows = max(sub, (tile_bytes // (lane * itemsize)) // sub * sub)
        tile_rows = min(rows, max_rows)
        grid = (pl.cdiv(rows, tile_rows),)
        in_spec = pl.BlockSpec((tile_rows, lane), lambda i: (i, 0))
        out_spec = pl.BlockSpec((tile_rows, lane), lambda i: (i, 0))
        # 'parallel' lets the runtime shard the copy across v7x's 2 TensorCores
        # (no-op on single-TC v5e/v6e).
        # TODO(synk): profile on v7x whether CORE_PARALLEL / pl.core_map gives
        # true 2-core sharding of this 1-D grid.
        compiler_params = pltpu.CompilerParams(
            dimension_semantics=("parallel",),
            vmem_limit_bytes=vmem_limit,
        )
    elif total_bytes <= tile_bytes:
        # Rows not sublane-aligned but the whole slab is small: one full-extent
        # block (always legal, bounded VMEM use by construction).
        grid = ()
        in_spec = pl.BlockSpec((rows, lane), lambda: (0, 0))
        out_spec = pl.BlockSpec((rows, lane), lambda: (0, 0))
        compiler_params = pltpu.CompilerParams(vmem_limit_bytes=vmem_limit)
    else:
        # Large and unaligned: do not stage the whole array in VMEM.
        return None

    return pl.pallas_call(
        _copy_kernel,
        out_shape=jax.ShapeDtypeStruct((rows, lane), x2d.dtype),
        grid=grid,
        in_specs=[in_spec],
        out_specs=out_spec,
        input_output_aliases=aliases,
        compiler_params=compiler_params,
        cost_estimate=cost,
    )(x2d)


class Channel:
    """JAX/Pallas equivalent of the PyTorch Channel module (a reshape)."""

    def __init__(self, size, use_pallas: bool = False, alias_input: bool = False):
        self.size = list(size)
        # use_pallas=False is the recommended production path: the reshape is
        # metadata-only in XLA and costs nothing.  alias_input=True is only
        # beneficial when the caller donates the input at a jit boundary.
        self.use_pallas = use_pallas
        self.alias_input = alias_input

    def __repr__(self):
        return f"Channel({self.size})"

    def __call__(self, x):
        bs = x.shape[0]
        flat = int(math.prod(x.shape[1:]))
        target_flat = int(math.prod(self.size))
        assert flat == target_flat, (
            f"cannot view {x.shape} as [{bs}] + {self.size}"
        )

        if not self.use_pallas:
            return x.reshape([bs] + self.size)

        total = bs * flat
        slab = _pick_slab(total, x.dtype)
        if slab is None:
            # total not a multiple of 128: no lane-dense slab exists -> just do
            # the (free) reshape instead of a degenerate kernel.
            return x.reshape([bs] + self.size)

        rows, lane = slab
        # Lane/sublane-dense re-layout (row-major order preserved, so this is
        # byte-identical to torch's .view element ordering).
        x2d = x.reshape(rows, lane)
        out2d = _pallas_identity_copy(x2d, alias_input=self.alias_input)
        if out2d is None:
            # no bounded-VMEM kernel layout -> free reshape
            return x.reshape([bs] + self.size)
        # Final view/reshape (glue, metadata-only).
        return out2d.reshape([bs] + self.size)


if __name__ == "__main__":
    key = jax.random.PRNGKey(0)
    # Input consistent with an NCHW conv feature map: (batch=2, C=4, H=16, W=16)
    x = jax.random.normal(key, (2, 4, 16, 16), dtype=jnp.float32)

    # size chosen so prod(size) == 4*16*16 == 1024 (same as torch .view contract)
    channel = Channel(size=[16, 8, 8], use_pallas=True)

    y = jax.block_until_ready(channel(x))
    assert y.shape == (2, 16, 8, 8), y.shape
    ref = x.reshape(2, 16, 8, 8)
    assert jnp.array_equal(y, ref), "kernel output mismatch vs reshape reference"

    # bf16 exercises the packed-dtype sublane path (sub = 16)
    xb = x.astype(jnp.bfloat16)
    yb = jax.block_until_ready(Channel(size=[16, 8, 8], use_pallas=True)(xb))
    assert yb.shape == (2, 16, 8, 8)
    assert jnp.array_equal(yb, xb.reshape(2, 16, 8, 8))

    # kernel-free (recommended production) path
    y2 = jax.block_until_ready(Channel(size=[16, 8, 8], use_pallas=False)(x))
    assert jnp.array_equal(y2, ref)

    print("KERNEL_OK")
</pallas_src>

<mosaic_0001>
module attributes {stable_mosaic.version = 11 : i64} {
  func.func @_copy_kernel(%arg0: i32, %arg1: memref<8x256xf32, #tpu.memory_space<vmem>>, %arg2: memref<8x256xf32, #tpu.memory_space<vmem>>) attributes {dimension_semantics = [#tpu.dimension_semantics<parallel>], iteration_bounds = array<i64: 1>, scalar_prefetch = 0 : i64, scratch_operands = 0 : i64, tpu.core_type = #tpu.core_type<tc>, window_params = [{transform_indices = @transform_0, window_bounds = array<i64: 8, 256>}, {transform_indices = @transform_1, window_bounds = array<i64: 8, 256>}]} {
    %c0 = arith.constant 0 : index
    %c0_0 = arith.constant 0 : index
    %0 = vector.load %arg1[%c0, %c0_0] : memref<8x256xf32, #tpu.memory_space<vmem>>, vector<8x256xf32>
    %c0_1 = arith.constant 0 : index
    %c0_2 = arith.constant 0 : index
    %1 = vector.load %arg2[%c0_1, %c0_2] : memref<8x256xf32, #tpu.memory_space<vmem>>, vector<8x256xf32>
    tpu.vector_store %arg2[%c0_1, %c0_2], %0 {strides = array<i32>} : memref<8x256xf32, #tpu.memory_space<vmem>>, vector<8x256xf32>,
    return
  }
  func.func @transform_0(%arg0: i32) -> (i32, i32) {
    %c0_i32 = arith.constant 0 : i32
    %c0_i32_0 = arith.constant 0 : i32
    return %arg0, %c0_i32 : i32, i32
  }
  func.func @transform_1(%arg0: i32) -> (i32, i32) {
    %c0_i32 = arith.constant 0 : i32
    %c0_i32_0 = arith.constant 0 : i32
    return %arg0, %c0_i32 : i32, i32
  }
}

</mosaic_0001>

<bundles_post_ra>
// kernel: tpu_custom_call.1
= control target key start
LH: loop header
LB: loop body
LE: loop exit
PB: predicated region body
PF: predicated region fallthrough
CT: control target
= control target key end

     0   :  { %6 = vsyncpa [#allocation3], 0  ;;  %s104_s0 = inlined_call_operand.hbm [shape: f32[8,256], index: 0, kind: input, shape index: {}]   ;;  %s105_s1 = inlined_call_operand.hbm [shape: f32[8,256], index: 1, kind: output, shape index: {}]  }
   0x1   :  { %7 = vsyncpa [#allocation4], 0  ;;  %s86_s6 = smov [#allocation2]  }
   0x2   :  { %s14_s7 = sshll.u32 %s86_s6, 4  ;;  %s15_s7 = int_to_ptr.vmem [resolvable:$true] %s14_s7 }
   0x3   :  { %s50_s8 = scalar_lea.vmem %s15_s7, 256  ;;  %p55_p1 = scmp.lt.s32.totalorder %s15_s7, %s15_s7 }
   0x4   :  { %p51_p0 = scmp.ne.s32.totalorder %s15_s7, %s50_s8  ;;  %p56_p2 = scmp.lt.s32.totalorder %s50_s8, %s50_s8 }
   0x6   :  { %p57_p3 = por %p56_p2, %p55_p1 }
   0x8   :  { %p58_p4 = pnand %p57_p3, %p51_p0 }
   0xa   :  { %61 = shalt.err (!%p58_p4)
}
   0xb   :  { %17 = dma.hbm_to_vmem [thread:$0]  %s104_s0, 256, %s15_s7, [#allocation3]  }
   0xc   :  { %82 = dma.done.wait [#allocation3], 256  }
   0xd   :  { %83 = vsyncadd [#allocation3], 4294967040  ;;  %s87_s11 = smov [#allocation5]   ;;  %v21_v0 = vld [vmem:[#allocation2] sm:$0xff]  ;;  %v22_v1 = vld [vmem:[#allocation2 + $0x8] sm:$0xff] }
   0xe   :  { %s31_s12 = sshll.u32 %s87_s11, 4  ;;  %23 = vst [vmem:[#allocation5] sm:$0xff] %v21_v0  ;;  %24 = vst [vmem:[#allocation5 + $0x8] sm:$0xff] %v22_v1  ;;  %s32_s12 = int_to_ptr.vmem [resolvable:$true] %s31_s12 }
   0xf   :  { %s62_s13 = scalar_lea.vmem %s32_s12, 256  ;;  %p67_p6 = scmp.lt.s32.totalorder %s32_s12, %s32_s12 }
  0x10   :  { %p63_p5 = scmp.ne.s32.totalorder %s32_s12, %s62_s13  ;;  %p68_p7 = scmp.lt.s32.totalorder %s62_s13, %s62_s13 }
  0x12   :  { %p69_p8 = por %p68_p7, %p67_p6 }
  0x14   :  { %p70_p9 = pnand %p69_p8, %p63_p5 }
  0x16   :  { %73 = shalt.err (!%p70_p9)
}
  0x17   :  { %34 = dma.vmem_to_hbm [thread:$0]  %s32_s12, 256, %s105_s1, [#allocation4]  }
  0x18   :  { %84 = dma.done.wait [#allocation4], 256  }
  0x19   :  { %85 = vsyncadd [#allocation4], 4294967040 }
  0x1a   :  { %38 = vsyncpa [#allocation3], 1 }
  0x1b   :  { %39 = vsyncpa [#allocation4], 1 }

</bundles_post_ra>
